<compile_context>
chip_gen: v7x
topology: tpu7x:2x2x1
jax: 0.10.0
libtpu: 0.0.40
codegen_flags: <defaults>
</compile_context>

<pallas_src>
import functools

import jax
import jax.numpy as jnp
from jax import lax
from jax.experimental import pallas as pl
from jax.experimental.pallas import tpu as pltpu

# Cast matmul operands to bf16 (f32 accumulation) for MXU peak on v5e/v6e/v7x.
# Off by default to stay numerically close to the f32 PyTorch reference.
USE_BF16_MATMUL = False


def _round_up(x, m):
    return (x + m - 1) // m * m


def _pick_tm(m):
    """Row tile: multiple of 8, <=512 rows, >=2 grid steps when possible."""
    tm = -(-m // 2)                      # ceil(m/2) -> at least 2 grid steps
    tm = _round_up(max(tm, 8), 8)
    return min(512, tm)


# ---------------------------------------------------------------------------
# Kernel 1a: per-column sum / sum-of-squares of y = A @ B + bias, tiled over
# rows.  Gives the BatchNorm batch statistics of the deconv output without
# ever writing y to HBM (outputs are tiny (1, 4*Cout) accumulators).
# ---------------------------------------------------------------------------
def _deconv_stats_kernel(a_ref, b_ref, bias_ref, sum_ref, sq_ref, *, m_total, tm):
    i = pl.program_id(0)

    @pl.when(i == 0)
    def _():
        sum_ref[...] = jnp.zeros_like(sum_ref)
        sq_ref[...] = jnp.zeros_like(sq_ref)

    y = jnp.dot(a_ref[...], b_ref[...], preferred_element_type=jnp.float32)
    y = y + bias_ref[...]
    # Mask rows past the true M (the last tile may be padded by the pipeline).
    rows = lax.broadcasted_iota(jnp.int32, (tm, 1), 0) + i * tm
    y = jnp.where(rows < m_total, y, 0.0)
    sum_ref[...] += jnp.sum(y, axis=0, keepdims=True)
    sq_ref[...] += jnp.sum(y * y, axis=0, keepdims=True)


# ---------------------------------------------------------------------------
# Kernel 1b: out = relu((A @ B) * scale + shift), tiled over rows.  scale and
# shift fold the deconv bias and the BatchNorm (batch-stats) affine.
# ---------------------------------------------------------------------------
def _deconv_norm_kernel(a_ref, b_ref, scale_ref, shift_ref, o_ref):
    y = jnp.dot(a_ref[...], b_ref[...], preferred_element_type=jnp.float32)
    o_ref[...] = jnp.maximum(y * scale_ref[...] + shift_ref[...], 0.0)


# ---------------------------------------------------------------------------
# Kernel 2: 3x3 valid convolution + ReLU, NHWC, one image per grid step.
# Patches are built in-kernel from the VMEM-resident image (no HBM im2col).
# Several inputs share the K reduction, so concat([x, skip]) is never
# materialized.  (Whole image per grid step is fine at these sizes; row-tile
# the H axis for large feature maps.)
# ---------------------------------------------------------------------------
def _conv3x3_relu_kernel(*args, num_in, ho, wo):
    x_refs = args[:num_in]
    w_refs = args[num_in:2 * num_in]
    bias_ref = args[2 * num_in]
    o_ref = args[2 * num_in + 1]
    cout = o_ref.shape[-1]
    bias = bias_ref[...]                                 # hoisted, loop-invariant

    def body(oh, carry):
        acc = jnp.zeros((wo, cout), jnp.float32)
        for x_ref, w_ref in zip(x_refs, w_refs):
            for kh in range(3):
                row = x_ref[oh + kh]                     # (W, Cin_part)
                for kw in range(3):
                    acc = acc + jnp.dot(row[kw:kw + wo, :], w_ref[kh * 3 + kw],
                                        preferred_element_type=jnp.float32)
        o_ref[oh] = jnp.maximum(acc + bias, 0.0)
        return carry

    lax.fori_loop(0, ho, body, 0)


def conv3x3_relu_nhwc(xs, ws, bias):
    """relu(conv3x3_valid(concat(xs, channel)) + bias), NHWC.

    xs: list of NHWC inputs sharing (N, H, W); ws[i]: (9, C_i, Cout) with the
    kernel-position axis ordered kh*3+kw.
    """
    N, H, W, _ = xs[0].shape
    Cout = ws[0].shape[-1]
    Ho, Wo = H - 2, W - 2

    if USE_BF16_MATMUL:
        xs = [x.astype(jnp.bfloat16) for x in xs]
        ws = [w.astype(jnp.bfloat16) for w in ws]

    in_specs = []
    for x in xs:
        in_specs.append(pl.BlockSpec((None, H, W, x.shape[-1]),
                                     lambda n: (n, 0, 0, 0)))
    for w in ws:
        in_specs.append(pl.BlockSpec(w.shape, lambda n: (0, 0, 0)))
    in_specs.append(pl.BlockSpec((1, Cout), lambda n: (0, 0)))

    return pl.pallas_call(
        functools.partial(_conv3x3_relu_kernel, num_in=len(xs), ho=Ho, wo=Wo),
        out_shape=jax.ShapeDtypeStruct((N, Ho, Wo, Cout), jnp.float32),
        grid=(N,),
        in_specs=in_specs,
        out_specs=pl.BlockSpec((None, Ho, Wo, Cout), lambda n: (n, 0, 0, 0)),
        compiler_params=pltpu.CompilerParams(
            dimension_semantics=("parallel",)),
    )(*xs, *ws, bias.reshape(1, Cout))


# ---------------------------------------------------------------------------
# Fused ConvTranspose2d(k=2, s=2) -> BatchNorm2d (batch stats) -> ReLU, NHWC.
# ---------------------------------------------------------------------------
def deconv_bn_relu(x, w, b, gamma, beta, eps=1e-5):
    """x: (N,H,W,Cin); w: (Cin,Cout,2,2) PyTorch layout.  Returns (N,2H,2W,Cout)."""
    N, H, W, Cin = x.shape
    Cout = w.shape[1]
    Np = 4 * Cout                       # packed columns ordered (di, dj, co)
    M = N * H * W

    A = x.reshape(M, Cin)               # NHWC rows -> contiguous reshape
    B = jnp.transpose(w, (0, 2, 3, 1)).reshape(Cin, Np)
    bias_col = jnp.tile(b, 4)

    if USE_BF16_MATMUL:
        A = A.astype(jnp.bfloat16)
        B = B.astype(jnp.bfloat16)

    TM = _pick_tm(M)
    grid = (-(-M // TM),)

    # Pass 1: batch statistics of y = A@B + bias (y is never written to HBM).
    col_sum, col_sq = pl.pallas_call(
        functools.partial(_deconv_stats_kernel, m_total=M, tm=TM),
        out_shape=(jax.ShapeDtypeStruct((1, Np), jnp.float32),
                   jax.ShapeDtypeStruct((1, Np), jnp.float32)),
        grid=grid,
        in_specs=[pl.BlockSpec((TM, Cin), lambda i: (i, 0)),
                  pl.BlockSpec((Cin, Np), lambda i: (0, 0)),
                  pl.BlockSpec((1, Np), lambda i: (0, 0))],
        out_specs=(pl.BlockSpec((1, Np), lambda i: (0, 0)),
                   pl.BlockSpec((1, Np), lambda i: (0, 0))),
        compiler_params=pltpu.CompilerParams(
            dimension_semantics=("arbitrary",)),
    )(A, B, bias_col.reshape(1, Np))

    # Combine the 4 (di, dj) groups into per-channel stats (tiny vectors).
    count = 4.0 * M                     # N * 2H * 2W elements per channel
    mean = col_sum.reshape(4, Cout).sum(axis=0) / count
    # TODO(synk): E[y^2]-E[y]^2 can cancel when |mean|>>std; fine at these scales.
    var = col_sq.reshape(4, Cout).sum(axis=0) / count - mean * mean
    scale_ch = gamma * lax.rsqrt(var + eps)     # biased var (PyTorch BN fwd)
    shift_ch = beta - mean * scale_ch
    scale_col = jnp.tile(scale_ch, 4)
    shift_col = jnp.tile(shift_ch, 4) + bias_col * scale_col

    # Pass 2: recompute the matmul (cheaper than round-tripping y through HBM),
    # apply BN affine + ReLU, write the packed output.
    y = pl.pallas_call(
        _deconv_norm_kernel,
        out_shape=jax.ShapeDtypeStruct((M, Np), jnp.float32),
        grid=grid,
        in_specs=[pl.BlockSpec((TM, Cin), lambda i: (i, 0)),
                  pl.BlockSpec((Cin, Np), lambda i: (0, 0)),
                  pl.BlockSpec((1, Np), lambda i: (0, 0)),
                  pl.BlockSpec((1, Np), lambda i: (0, 0))],
        out_specs=pl.BlockSpec((TM, Np), lambda i: (i, 0)),
        compiler_params=pltpu.CompilerParams(
            dimension_semantics=("parallel",)),
    )(A, B, scale_col.reshape(1, Np), shift_col.reshape(1, Np))

    # Un-interleave the 2x2 deconv positions: (n,h,w,di,dj,c) -> (n,2h,2w,c).
    y = y.reshape(N, H, W, 2, 2, Cout).transpose(0, 1, 3, 2, 4, 5)
    return y.reshape(N, 2 * H, 2 * W, Cout)


# ---------------------------------------------------------------------------
# Plain-JAX glue.
# ---------------------------------------------------------------------------
def nearest_resize_nhwc(skip, size):
    """torch.nn.functional.interpolate(mode='nearest') to (size, size), NHWC."""
    # TODO(synk): gather-style op kept in plain JAX (no Pallas win at this size).
    N, Hs, Ws, C = skip.shape
    idx_h = (jnp.arange(size) * Hs) // size     # exact floor(i * Hs / size)
    idx_w = (jnp.arange(size) * Ws) // size
    return skip[:, idx_h[:, None], idx_w[None, :], :]


def _conv_w(w):
    """PyTorch Conv2d weight (Cout, Cin, 3, 3) -> (9, Cin, Cout), axis kh*3+kw."""
    cout, cin = w.shape[0], w.shape[1]
    return jnp.transpose(w, (2, 3, 1, 0)).reshape(9, cin, cout)


def decoder_forward(x_nchw, skips_nchw, params):
    """Matches Decoder.forward; x, skips, output all NCHW like PyTorch."""
    x = jnp.transpose(x_nchw, (0, 2, 3, 1))                        # -> NHWC
    skips = [jnp.transpose(s, (0, 2, 3, 1)) for s in skips_nchw][::-1]
    for i, p in enumerate(params):
        skip = skips[i]
        # decoder_block: ConvTranspose2d(2,2) -> BatchNorm2d -> ReLU (fused).
        x = deconv_bn_relu(x, p["dec_w"], p["dec_b"], p["bn_gamma"], p["bn_beta"])
        # nearest-interpolate skip to x.shape[-1] (spatial W in NCHW terms).
        skip = nearest_resize_nhwc(skip, x.shape[2])
        # encoder_block: Conv3x3+ReLU on concat([x, skip], C) without
        # materializing the concat (K reduction split in-kernel), then
        # Conv3x3+ReLU.
        c1 = x.shape[-1]
        w1 = p["enc_w1"]
        x = conv3x3_relu_nhwc([x, skip],
                              [_conv_w(w1[:, :c1]), _conv_w(w1[:, c1:])],
                              p["enc_b1"])
        x = conv3x3_relu_nhwc([x], [_conv_w(p["enc_w2"])], p["enc_b2"])
    return jnp.transpose(x, (0, 3, 1, 2))                          # -> NCHW


def init_params(channels, key):
    params = []
    for i in range(len(channels) - 1):
        cin, cout = channels[i], channels[i + 1]
        key, *ks = jax.random.split(key, 7)
        params.append(dict(
            dec_w=0.1 * jax.random.normal(ks[0], (cin, cout, 2, 2), jnp.float32),
            dec_b=0.1 * jax.random.normal(ks[1], (cout,), jnp.float32),
            bn_gamma=jnp.ones((cout,), jnp.float32),
            bn_beta=jnp.zeros((cout,), jnp.float32),
            enc_w1=0.1 * jax.random.normal(ks[2], (cout, cin, 3, 3), jnp.float32),
            enc_b1=0.1 * jax.random.normal(ks[3], (cout,), jnp.float32),
            enc_w2=0.1 * jax.random.normal(ks[4], (cout, cout, 3, 3), jnp.float32),
            enc_b2=0.1 * jax.random.normal(ks[5], (cout,), jnp.float32),
        ))
    return params


if __name__ == "__main__":
    channels = (16, 8, 4)
    key = jax.random.PRNGKey(0)
    k_x, k_s0, k_s1, k_p = jax.random.split(key, 4)

    # x: bottleneck feature map (NCHW); skips in encoder order (shallow->deep),
    # reversed inside forward.  Skip spatial sizes differ so nearest-interp is
    # exercised.
    x = jax.random.normal(k_x, (2, channels[0], 8, 8), jnp.float32)
    skip_shallow = jax.random.normal(k_s0, (2, channels[2], 28, 28), jnp.float32)
    skip_deep = jax.random.normal(k_s1, (2, channels[1], 20, 20), jnp.float32)
    skips = [skip_shallow, skip_deep]   # forward uses skips[::-1]

    params = init_params(channels, k_p)

    out = decoder_forward(x, skips, params)
    out = jax.block_until_ready(out)
    assert out.shape == (2, channels[-1], 20, 20), out.shape
    print("KERNEL_OK")
</pallas_src>

<mosaic_0001>
module attributes {stable_mosaic.version = 11 : i64} {
  func.func @_deconv_stats_kernel(%arg0: i32, %arg1: memref<64x16xf32, #tpu.memory_space<vmem>>, %arg2: memref<16x32xf32, #tpu.memory_space<vmem>>, %arg3: memref<1x32xf32, #tpu.memory_space<vmem>>, %arg4: memref<1x32xf32, #tpu.memory_space<vmem>>, %arg5: memref<1x32xf32, #tpu.memory_space<vmem>>) attributes {dimension_semantics = [#tpu.dimension_semantics<arbitrary>], iteration_bounds = array<i64: 2>, scalar_prefetch = 0 : i64, scratch_operands = 0 : i64, tpu.core_type = #tpu.core_type<tc>, window_params = [{transform_indices = @transform_0, window_bounds = array<i64: 64, 16>}, {pipeline_mode = #tpu.pipeline_mode<synchronous>, transform_indices = @transform_1, window_bounds = array<i64: 16, 32>}, {pipeline_mode = #tpu.pipeline_mode<synchronous>, transform_indices = @transform_2, window_bounds = array<i64: 1, 32>}, {pipeline_mode = #tpu.pipeline_mode<synchronous>, transform_indices = @transform_3, window_bounds = array<i64: 1, 32>}, {pipeline_mode = #tpu.pipeline_mode<synchronous>, transform_indices = @transform_4, window_bounds = array<i64: 1, 32>}]} {
    %c0_i32 = arith.constant 0 : i32
    %0 = arith.cmpi eq, %arg0, %c0_i32 : i32
    %1 = arith.extui %0 : i1 to i32
    %c0_i32_0 = arith.constant 0 : i32
    %2 = arith.cmpi ne, %1, %c0_i32_0 : i32
    scf.if %2 {
      %cst_17 = arith.constant 0.000000e+00 : f32
      %30 = vector.broadcast %cst_17 : f32 to vector<1x32xf32>
      %c0_18 = arith.constant 0 : index
      %c0_19 = arith.constant 0 : index
      %31 = vector.load %arg4[%c0_18, %c0_19] : memref<1x32xf32, #tpu.memory_space<vmem>>, vector<1x32xf32>
      tpu.vector_store %arg4[%c0_18, %c0_19], %30 {strides = array<i32>} : memref<1x32xf32, #tpu.memory_space<vmem>>, vector<1x32xf32>,
      %cst_20 = arith.constant 0.000000e+00 : f32
      %32 = vector.broadcast %cst_20 : f32 to vector<1x32xf32>
      %c0_21 = arith.constant 0 : index
      %c0_22 = arith.constant 0 : index
      %33 = vector.load %arg5[%c0_21, %c0_22] : memref<1x32xf32, #tpu.memory_space<vmem>>, vector<1x32xf32>
      tpu.vector_store %arg5[%c0_21, %c0_22], %32 {strides = array<i32>} : memref<1x32xf32, #tpu.memory_space<vmem>>, vector<1x32xf32>,
    } else {
    }
    %c0 = arith.constant 0 : index
    %c0_1 = arith.constant 0 : index
    %3 = vector.load %arg1[%c0, %c0_1] : memref<64x16xf32, #tpu.memory_space<vmem>>, vector<64x16xf32>
    %c0_2 = arith.constant 0 : index
    %c0_3 = arith.constant 0 : index
    %4 = vector.load %arg2[%c0_2, %c0_3] : memref<16x32xf32, #tpu.memory_space<vmem>>, vector<16x32xf32>
    %cst = arith.constant dense<0.000000e+00> : vector<64x32xf32>
    %5 = tpu.matmul %3, %4, %cst {dimension_numbers = #tpu.dot_dimension_numbers<[1], [0], [0], [1], [0, 0, 1, 1], [], []>} : vector<64x16xf32>, vector<16x32xf32>, vector<64x32xf32> -> vector<64x32xf32>
    %c0_4 = arith.constant 0 : index
    %c0_5 = arith.constant 0 : index
    %6 = vector.load %arg3[%c0_4, %c0_5] : memref<1x32xf32, #tpu.memory_space<vmem>>, vector<1x32xf32>
    %7 = vector.broadcast %6 : vector<1x32xf32> to vector<64x32xf32>
    %8 = arith.addf %5, %7 : vector<64x32xf32>
    %9 = tpu.iota {dimensions = array<i32: 0>} : vector<64x1xi32>
    %c64_i32 = arith.constant 64 : i32
    %10 = arith.muli %arg0, %c64_i32 : i32
    %11 = vector.broadcast %10 : i32 to vector<64x1xi32>
    %12 = arith.addi %9, %11 : vector<64x1xi32>
    %c128_i32 = arith.constant 128 : i32
    %13 = vector.broadcast %c128_i32 : i32 to vector<64x1xi32>
    %14 = arith.cmpi slt, %12, %13 : vector<64x1xi32>
    %cst_6 = arith.constant 0.000000e+00 : f32
    %15 = vector.shape_cast %14 : vector<64x1xi1> to vector<64x1xi1>
    %16 = vector.broadcast %15 : vector<64x1xi1> to vector<64x32xi1>
    %17 = vector.broadcast %cst_6 : f32 to vector<64x32xf32>
    %18 = arith.select %16, %8, %17 : vector<64x32xi1>, vector<64x32xf32>
    %c0_7 = arith.constant 0 : index
    %c0_8 = arith.constant 0 : index
    %19 = vector.load %arg4[%c0_7, %c0_8] : memref<1x32xf32, #tpu.memory_space<vmem>>, vector<1x32xf32>
    %cst_9 = arith.constant dense<0.000000e+00> : vector<32xf32>
    %20 = vector.multi_reduction <add>, %18, %cst_9 [0] : vector<64x32xf32> to vector<32xf32>
    %21 = vector.shape_cast %20 : vector<32xf32> to vector<1x32xf32>
    %22 = arith.addf %19, %21 : vector<1x32xf32>
    %c0_10 = arith.constant 0 : index
    %c0_11 = arith.constant 0 : index
    %23 = vector.load %arg4[%c0_10, %c0_11] : memref<1x32xf32, #tpu.memory_space<vmem>>, vector<1x32xf32>
    tpu.vector_store %arg4[%c0_10, %c0_11], %22 {strides = array<i32>} : memref<1x32xf32, #tpu.memory_space<vmem>>, vector<1x32xf32>,
    %c0_12 = arith.constant 0 : index
    %c0_13 = arith.constant 0 : index
    %24 = vector.load %arg5[%c0_12, %c0_13] : memref<1x32xf32, #tpu.memory_space<vmem>>, vector<1x32xf32>
    %25 = arith.mulf %18, %18 : vector<64x32xf32>
    %cst_14 = arith.constant dense<0.000000e+00> : vector<32xf32>
    %26 = vector.multi_reduction <add>, %25, %cst_14 [0] : vector<64x32xf32> to vector<32xf32>
    %27 = vector.shape_cast %26 : vector<32xf32> to vector<1x32xf32>
    %28 = arith.addf %24, %27 : vector<1x32xf32>
    %c0_15 = arith.constant 0 : index
    %c0_16 = arith.constant 0 : index
    %29 = vector.load %arg5[%c0_15, %c0_16] : memref<1x32xf32, #tpu.memory_space<vmem>>, vector<1x32xf32>
    tpu.vector_store %arg5[%c0_15, %c0_16], %28 {strides = array<i32>} : memref<1x32xf32, #tpu.memory_space<vmem>>, vector<1x32xf32>,
    return
  }
  func.func @transform_0(%arg0: i32) -> (i32, i32) {
    %c0_i32 = arith.constant 0 : i32
    %c0_i32_0 = arith.constant 0 : i32
    return %arg0, %c0_i32 : i32, i32
  }
  func.func @transform_1(%arg0: i32) -> (i32, i32) {
    %c0_i32 = arith.constant 0 : i32
    %c0_i32_0 = arith.constant 0 : i32
    %c0_i32_1 = arith.constant 0 : i32
    return %c0_i32, %c0_i32_0 : i32, i32
  }
  func.func @transform_2(%arg0: i32) -> (i32, i32) {
    %c0_i32 = arith.constant 0 : i32
    %c0_i32_0 = arith.constant 0 : i32
    %c0_i32_1 = arith.constant 0 : i32
    return %c0_i32, %c0_i32_0 : i32, i32
  }
  func.func @transform_3(%arg0: i32) -> (i32, i32) {
    %c0_i32 = arith.constant 0 : i32
    %c0_i32_0 = arith.constant 0 : i32
    %c0_i32_1 = arith.constant 0 : i32
    return %c0_i32, %c0_i32_0 : i32, i32
  }
  func.func @transform_4(%arg0: i32) -> (i32, i32) {
    %c0_i32 = arith.constant 0 : i32
    %c0_i32_0 = arith.constant 0 : i32
    %c0_i32_1 = arith.constant 0 : i32
    return %c0_i32, %c0_i32_0 : i32, i32
  }
}

</mosaic_0001>

<bundles_post_ra>
// kernel: tpu_custom_call.1
= control target key start
LH: loop header
LB: loop body
LE: loop exit
PB: predicated region body
PF: predicated region fallthrough
CT: control target
= control target key end

     0   :  { %10 = vsyncpa [#allocation3], 0  ;;  %s801_s0 = inlined_call_operand.vmem [shape: f32[128,16], index: 0, kind: input, shape index: {}]   ;;  %s802_s1 = inlined_call_operand.vmem [shape: f32[16,32], index: 1, kind: input, shape index: {}]   ;;  %s803_s2 = inlined_call_operand.vmem [shape: f32[1,32], index: 2, kind: input, shape index: {}]   ;;  %s804_s3 = inlined_call_operand.hbm [shape: f32[1,32], index: 3, kind: output, shape index: {0}]   ;;  %s805_s4 = inlined_call_operand.hbm [shape: f32[1,32], index: 4, kind: output, shape index: {1}]  }
   0x1   :  { %11 = vsyncpa [#allocation5], 0  ;;  %s690_s15 = smov 0  }
   0x2 LB: > { %s696_s16 = sadd.s32 4294967295, %s660_s15   ;;  %p519_p0 = scmp.ge.s32.totalorder %s660_s15, 1  ;;  %s660_s15 = sphi %s690_s15, %s17_s15  }
   0x3   : > { %p158_p1 = scmp.lt.s32.totalorder %s660_s15, 3 }
   0x5   : > { %p159_p2 = pnand %p519_p0, %p158_p1 }
   0x6   : > { %s520_s17 = sshll.u32 (!%p159_p2), %s696_s16, 3  ;;  %p522_p4 = scmp.ne.s32.totalorder (!%p159_p2), %s696_s16, 0 }
   0x7   : > { %162 = sbr.rel (%p159_p2) target bundleno = 313 (0x139), region = 32  ;;  %p180_p3 = scmp.lt.s32.totalorder (!%p159_p2), %s520_s17, 15 }
   0xe   : > { %s807_s17 = smov (!%p180_p3, %s520_s17), 15  ;;  %188 = sbr.rel (%p522_p4) target bundleno = 21 (0x15), region = 36 }
   0xf   : > { %s521_s18 = sshll.u32 %s807_s17, 3  ;;  %vm189_vm0 = vcmask (!%p522_p4), 253952   ;;  %v662_v0 = vmov (!%p522_p4), 0.0  }
  0x10   : > { %s183_s21 = scalar_lea.vmem %s801_s0, %s521_s18  ;;  %190 = vst.msk [vmem:[#allocation2] sm:$0x1] (!%p522_p4), %vm189_vm0, %v662_v0  ;;  %191 = vst.msk [vmem:[#allocation4] sm:$0x1] (!%p522_p4), %vm189_vm0, %v662_v0 }
  0x15 PF: > { %v200_v1 = vld [vmem:[%s802_s1] sm:$0xff]  ;;  %v201_v2 = vld [vmem:[%s802_s1 + $0x8] sm:$0xff]  ;;  %vm209_vm1 = vcmask 130048   ;;  %v194_v8 = vld [vmem:[%s183_s21 + $0x10] sm:$0xff]  ;;  %v339_v12 = vlaneseq  ;;  %s532_s26 = sshll.u32 %s696_s16, 6  ;;  %vm391_vm3 = vcmask 261120  }
  0x16   : > { %v192_v3 = vld [vmem:[%s183_s21] sm:$0xff]  ;;  %v565_v4 = vpack.c.bf16 %v201_v2, %v200_v1  ;;  %v193_v6 = vld [vmem:[%s183_s21 + $0x8] sm:$0xff]  ;;  %v198_v9 = vld [vmem:[%s183_s21 + $0x30] sm:$0xff]  ;;  %v349_v15 = vstv %s532_s26  ;;  %s663_s29 = smov [#allocation2]   ;;  %vm414_vm11 = vcmask 253952   ;;  %p579_p5 = scmp.eq.s32.totalorder %s696_s16, 1 }
  0x17   : > { %553 = vmatprep.mubr.msk.f32.mxu0 %vm209_vm1, %v192_v3  ;;  %v196_v5 = vld [vmem:[%s183_s21 + $0x20] sm:$0xff]  ;;  %v197_v7 = vld [vmem:[%s183_s21 + $0x28] sm:$0xff]  ;;  %v195_v10 = vld [vmem:[%s183_s21 + $0x18] sm:$0xff]  ;;  %v340_v13 = vshrl.u32 %v339_v12, 7  ;;  %s455_s30 = sshll.u32 %s663_s29, 4  ;;  %s664_s5 = smov [#allocation4]   ;;  %s456_s30 = int_to_ptr.vmem [resolvable:$true] %s455_s30 }
  0x18   : > { %566 = vmatprep.subr.bf16.mxu0 %v565_v4  ;;  %569 = vmatprep.subr.bf16.mxu1 %v565_v4  ;;  %v199_v11 = vld [vmem:[%s183_s21 + $0x38] sm:$0xff]  ;;  %v523_v21 = vld [vmem:[%s803_s2] ss:$0 sm:$0xff]  ;;  %s466_s6 = sshll.u32 %s664_s5, 4  ;;  %s594_s7 = scalar_lea.vmem %s456_s30, 16  ;;  %s745_s6 = int_to_ptr.vmem [resolvable:$true] %s466_s6 }
  0x19   : > { %568 = vmatpush3.bf16.msra.mxu0 %v565_v4  ;;  %570 = vmatpush3.bf16.msra.mxu1 %v565_v4  ;;  %v341_v14 = vadd.s32 8, %v340_v13  ;;  %v343_v16 = vadd.s32 24, %v340_v13  ;;  %v342_v17 = vadd.s32 16, %v340_v13  ;;  %v344_v18 = vadd.s32 32, %v340_v13  ;;  %p595_p6 = scmp.ne.s32.totalorder %s456_s30, %s594_s7  ;;  %s600_s8 = scalar_lea.vmem %s456_s30, 32 }
  0x1a   : > { %559 = vmatprep.mubr.msk.f32.mxu1 %vm209_vm1, %v196_v5  ;;  %v350_v20 = vadd.s32 %v349_v15, %v340_v13  ;;  %v345_v24 = vadd.s32 40, %v340_v13  ;;  %v346_v28 = vadd.s32 48, %v340_v13  ;;  %v347_v36 = vadd.s32 56, %v340_v13  ;;  %p601_p9 = scmp.lt.s32.totalorder %s456_s30, %s456_s30  ;;  %p602_p10 = scmp.lt.s32.totalorder %s600_s8, %s594_s7 }
  0x1b   : > { %v351_v19 = vadd.s32 %v349_v15, %v341_v14  ;;  %v353_v22 = vadd.s32 %v349_v15, %v343_v16  ;;  %v352_v23 = vadd.s32 %v349_v15, %v342_v17  ;;  %v354_v25 = vadd.s32 %v349_v15, %v344_v18  ;;  %p596_p7 = pnand %p595_p6, %p579_p5 }
  0x1c   : > { %554 = vmatmul.mubr.msk.f32.vlgmr.msra.gmra.mrb[0].mxu0 %vm209_vm1, %v193_v6  ;;  %560 = vmatmul.mubr.msk.f32.vlgmr.msra.gmra.mrb[0].mxu1 %vm209_vm1, %v197_v7  ;;  %vm358_vm4 = vcmp.lt.s32.totalorder %v350_v20, 128  ;;  %v355_v35 = vadd.s32 %v349_v15, %v345_v24  ;;  %v356_v42 = vadd.s32 %v349_v15, %v346_v28  ;;  %v357_v55 = vadd.s32 %v349_v15, %v347_v36  ;;  %p603_p11 = por %p602_p10, %p601_p9 }
  0x1d   : > { %556 = vmatprep.mubr.msk.f32.mxu0 %vm209_vm1, %v194_v8  ;;  %562 = vmatprep.mubr.msk.f32.mxu1 %vm209_vm1, %v198_v9  ;;  %vm359_vm2 = vcmp.lt.s32.totalorder %v351_v19, 128  ;;  %vm361_vm5 = vcmp.lt.s32.totalorder %v353_v22, 128  ;;  %vm360_vm6 = vcmp.lt.s32.totalorder %v352_v23, 128  ;;  %vm362_vm7 = vcmp.lt.s32.totalorder %v354_v25, 128  ;;  %p597_p8 = pneg %p596_p7 }
  0x1e   : > { %vm363_vm8 = vcmp.lt.s32.totalorder %v355_v35, 128  ;;  %vm364_vm9 = vcmp.lt.s32.totalorder %v356_v42, 128  ;;  %vm365_vm10 = vcmp.lt.s32.totalorder %v357_v55, 128 }
  0x1f   : > { %p604_p12 = pnand %p603_p11, %p597_p8 }
  0x20   : > { %557 = vmatmul.mubr.msk.f32.gmra.mrb[2].mxu0 %vm209_vm1, %v195_v10  ;;  %563 = vmatmul.mubr.msk.f32.gmra.mrb[2].mxu1 %vm209_vm1, %v199_v11 }
  0xef   : > { %v555_v26 = vpop.f32.mrb[0].mxu0  ;;  %v561_v27 = vpop.f32.mrb[0].mxu1 }
  0xf0   : > { %v306_v29 = vadd.f32 %v555_v26, %v523_v21  ;;  %v300_v30 = vpop.f32.mrb[1].mxu0  ;;  %v320_v31 = vpop.f32.mrb[1].mxu1  ;;  %v326_v47 = vadd.f32 %v561_v27, %v523_v21 }
  0xf1   : > { %v301_v32 = vadd.f32 %v523_v21, %v300_v30  ;;  %v321_v33 = vadd.f32 %v523_v21, %v320_v31 }
  0xf2   : > { %v383_v34 = vsel %vm359_vm2, %v306_v29, 0.0  ;;  %v387_v63 = vsel %vm363_vm8, %v326_v47, 0.0 }
  0xf3   : > { %v393_v37 = vsel %vm391_vm3, %v383_v34, 0.0  ;;  %v418_v38 = vmul.f32 %v383_v34, %v383_v34  ;;  %v382_v39 = vsel %vm358_vm4, %v301_v32, 0.0  ;;  %v558_v40 = vpop.f32.mrb[2].mxu0  ;;  %v564_v41 = vpop.f32.mrb[2].mxu1  ;;  %v386_v52 = vsel %vm362_vm7, %v321_v33, 0.0 }
  0xf4   : > { %v392_v43 = vsel %vm391_vm3, %v382_v39, 0.0  ;;  %v417_v44 = vmul.f32 %v382_v39, %v382_v39  ;;  %v316_v45 = vadd.f32 %v558_v40, %v523_v21  ;;  %v310_v46 = vpop.f32.mrb[3].mxu0  ;;  %v330_v48 = vpop.f32.mrb[3].mxu1  ;;  %v421_v61 = vmul.f32 %v386_v52, %v386_v52 }
  0xf5   : > { %v426_v49 = vsel %vm391_vm3, %v418_v38, 0.0  ;;  %v394_v50 = vadd.f32 %v393_v37, %v392_v43  ;;  %v311_v51 = vadd.f32 %v523_v21, %v310_v46  ;;  %v336_v0 = vadd.f32 %v564_v41, %v523_v21  ;;  %v390_v38 = vld [vmem:[#allocation2] sm:$0x1]  ;;  %v416_v41 = vld [vmem:[#allocation4] sm:$0x1] }
  0xf6   : > { %v425_v53 = vsel %vm391_vm3, %v417_v44, 0.0  ;;  %v385_v54 = vsel %vm361_vm5, %v316_v45, 0.0  ;;  %v331_v1 = vadd.f32 %v523_v21, %v330_v48  ;;  %v399_v4 = vsel %vm391_vm3, %v386_v52, 0.0 }
  0xf7   : > { %v427_v56 = vadd.f32 %v426_v49, %v425_v53  ;;  %v384_v57 = vsel %vm360_vm6, %v311_v51, 0.0  ;;  %v420_v58 = vmul.f32 %v385_v54, %v385_v54  ;;  %v397_v2 = vsel %vm391_vm3, %v385_v54, 0.0 }
  0xf8   : > { %v395_v59 = vsel %vm391_vm3, %v384_v57, 0.0  ;;  %v419_v60 = vmul.f32 %v384_v57, %v384_v57  ;;  %v422_v8 = vmul.f32 %v387_v63, %v387_v63  ;;  %v432_v9 = vsel %vm391_vm3, %v421_v61, 0.0 }
  0xf9   : > { %v396_v62 = vadd.f32 %v395_v59, %v394_v50  ;;  %v430_v7 = vsel %vm391_vm3, %v420_v58, 0.0  ;;  %v388_v10 = vsel %vm364_vm9, %v331_v1, 0.0  ;;  %v389_v13 = vsel %vm365_vm10, %v336_v0, 0.0 }
  0xfa   : > { %v428_v3 = vsel %vm391_vm3, %v419_v60, 0.0  ;;  %v401_v14 = vsel %vm391_vm3, %v387_v63, 0.0  ;;  %v403_v15 = vsel %vm391_vm3, %v388_v10, 0.0  ;;  %v423_v16 = vmul.f32 %v388_v10, %v388_v10 }
  0xfb   : > { %v429_v5 = vadd.f32 %v428_v3, %v427_v56  ;;  %v398_v6 = vadd.f32 %v397_v2, %v396_v62  ;;  %v434_v19 = vsel %vm391_vm3, %v422_v8, 0.0  ;;  %v424_v20 = vmul.f32 %v389_v13, %v389_v13 }
  0xfc   : > { %v436_v21 = vsel %vm391_vm3, %v423_v16, 0.0  ;;  %v405_v24 = vsel %vm391_vm3, %v389_v13, 0.0 }
  0xfd   : > { %v400_v11 = vadd.f32 %v399_v4, %v398_v6  ;;  %v431_v12 = vadd.f32 %v430_v7, %v429_v5  ;;  %v438_v27 = vsel %vm391_vm3, %v424_v20, 0.0 }
  0xff   : > { %v433_v17 = vadd.f32 %v432_v9, %v431_v12  ;;  %v402_v18 = vadd.f32 %v401_v14, %v400_v11 }
 0x101   : > { %v404_v22 = vadd.f32 %v403_v15, %v402_v18  ;;  %v435_v23 = vadd.f32 %v434_v19, %v433_v17 }
 0x103   : > { %v406_v25 = vadd.f32 %v405_v24, %v404_v22  ;;  %v437_v26 = vadd.f32 %v436_v21, %v435_v23 }
 0x105   : > { %v407_v28 = vrot.slane %v406_v25, 4  ;;  %v439_v29 = vadd.f32 %v438_v27, %v437_v26 }
 0x107   : > { %v408_v30 = vadd.f32 %v407_v28, %v406_v25  ;;  %v440_v31 = vrot.slane %v439_v29, 4 }
 0x109   : > { %v409_v32 = vrot.slane %v408_v30, 2  ;;  %v441_v33 = vadd.f32 %v440_v31, %v439_v29 }
 0x10b   : > { %v410_v34 = vadd.f32 %v409_v32, %v408_v30  ;;  %v442_v35 = vrot.slane %v441_v33, 2 }
 0x10d   : > { %v411_v36 = vrot.slane %v410_v34, 1  ;;  %v443_v37 = vadd.f32 %v442_v35, %v441_v33 }
 0x10f   : > { %v412_v39 = vadd.f32 %v411_v36, %v410_v34  ;;  %v444_v40 = vrot.slane %v443_v37, 1 }
 0x111   : > { %v413_v42 = vadd.f32 %v412_v39, %v390_v38  ;;  %v445_v43 = vadd.f32 %v444_v40, %v443_v37 }
 0x113   : > { %415 = vst.msk [vmem:[#allocation2] sm:$0x1] %vm414_vm11, %v413_v42  ;;  %v446_v44 = vadd.f32 %v445_v43, %v416_v41 }
 0x114   : > { %607 = shalt.err (!%p604_p12)
}
 0x115   : > { %s608_s11 = scalar_lea.hbm %s804_s3, 16 }
 0x116   : > { %p609_p13 = scmp.ne.s32.totalorder %s804_s3, %s608_s11  ;;  %p614_p2 = scmp.lt.u32.totalorder %s608_s11, %s804_s3 }
 0x118   : > { %p610_p0 = pnand %p609_p13, %p579_p5 }
 0x11a   : > { %p611_p1 = pneg %p610_p0 }
 0x11c   : > { %p616_p3 = pnand %p614_p2, %p611_p1 }
 0x11e   : > { %619 = shalt.err (!%p616_p3)
}
 0x11f   : > { %572 = dma.vmem_to_hbm [thread:$0]  (%p579_p5), %s456_s30, 16, %s804_s3, [#allocation3]   ;;  %447 = vst.msk [vmem:[#allocation4] sm:$0x1] %vm414_vm11, %v446_v44 }
 0x120   : > { %s620_s20 = scalar_lea.vmem %s745_s6, 16  ;;  %s626_s21 = scalar_lea.vmem %s745_s6, 32 }
 0x121   : > { %p621_p4 = scmp.ne.s32.totalorder %s745_s6, %s620_s20  ;;  %p627_p8 = scmp.lt.s32.totalorder %s745_s6, %s745_s6 }
 0x122   : > { %p628_p9 = scmp.lt.s32.totalorder %s626_s21, %s620_s20 }
 0x123   : > { %p622_p6 = pnand %p621_p4, %p579_p5 }
 0x124   : > { %p629_p10 = por %p628_p9, %p627_p8 }
 0x125   : > { %p623_p7 = pneg %p622_p6 }
 0x127   : > { %p630_p11 = pnand %p629_p10, %p623_p7 }
 0x129   : > { %633 = shalt.err (!%p630_p11)
}
 0x12a   : > { %s634_s24 = scalar_lea.hbm %s805_s4, 16 }
 0x12b   : > { %p635_p12 = scmp.ne.s32.totalorder %s805_s4, %s634_s24  ;;  %p640_p1 = scmp.lt.u32.totalorder %s634_s24, %s805_s4 }
 0x12d   : > { %p636_p13 = pnand %p635_p12, %p579_p5 }
 0x12f   : > { %p637_p0 = pneg %p636_p13 }
 0x131   : > { %p642_p2 = pnand %p640_p1, %p637_p0 }
 0x133   : > { %645 = shalt.err (!%p642_p2)
}
 0x134   : > { %574 = dma.vmem_to_hbm [thread:$0]  (%p579_p5), %s745_s6, 16, %s805_s4, [#allocation5]  }
 0x135   : > { %651 = dma.done.wait (%p579_p5), [#allocation3], 16  }
 0x136   : > { %653 = vsyncadd (%p579_p5), [#allocation3], 4294967280 }
 0x137   : > { %655 = dma.done.wait (%p579_p5), [#allocation5], 16  }
 0x138   : > { %657 = vsyncadd (%p579_p5), [#allocation5], 4294967280 }
 0x139 PF: > { %s17_s15 = sadd.s32 1, %s660_s15  }
 0x13a   : > { %p14_p3 = scmp.ge.s32.totalorder %s17_s15, 4  }
 0x13c   :  { %16 = sbr.rel (!%p14_p3) target bundleno = 2 (0x2), region = 71 }
 0x143   :  { %483 = vsyncpa [#allocation3], 1 }
 0x144   :  { %485 = vsyncpa [#allocation3 + $0x1], 1 }
 0x145   :  { %486 = vsyncpa [#allocation5], 1 }

</bundles_post_ra>
